<compile_context>
chip_gen: v6e
topology: v6e:2x2x1
jax: 0.10.0
libtpu: 0.0.40
codegen_flags: <defaults>
</compile_context>

<pallas_src>
import functools

import jax
import jax.numpy as jnp
from jax import lax
from jax.experimental import pallas as pl
from jax.experimental.pallas import tpu as pltpu


def _round_up(x, m):
    return (x + m - 1) // m * m


def _round_down(x, m):
    return (x // m) * m


def _cdiv(a, b):
    return (a + b - 1) // b


_INV_SQRT2 = 0.7071067811865476
_SQRT_2_OVER_PI = 0.7978845608028654


def _gelu_f32(h, approximate):
    if approximate:
        # tanh GELU: the transcendental runs on the EUP slot (near-free next
        # to the MXU work).  Opt-in only: numerics differ from torch default.
        inner = _SQRT_2_OVER_PI * (h + 0.044715 * (h * h * h))
        return 0.5 * h * (1.0 + jnp.tanh(inner))
    # Exact erf GELU (torch.nn.GELU() default); constants folded.
    return h * (0.5 + 0.5 * lax.erf(h * jnp.float32(_INV_SQRT2)))


def _mlp_kernel_resident(x_ref, w1_ref, w2_ref, o_ref, *, approximate):
    # fc1 in the storage dtype (bf16-native MXU), f32 accumulation.
    h = jnp.dot(x_ref[...], w1_ref[...], preferred_element_type=jnp.float32)
    h = _gelu_f32(h, approximate)
    # Dropout(p=0.0) is the identity -> no-op.
    o_ref[...] = jnp.dot(h.astype(w2_ref.dtype), w2_ref[...],
                         preferred_element_type=jnp.float32).astype(o_ref.dtype)


def _mlp_kernel_hidden_tiled(x_ref, w1_ref, w2_ref, o_ref, acc_ref, *,
                             approximate):
    j = pl.program_id(1)

    @pl.when(j == 0)
    def _init():
        acc_ref[...] = jnp.zeros_like(acc_ref)

    h = jnp.dot(x_ref[...], w1_ref[...], preferred_element_type=jnp.float32)
    h = _gelu_f32(h, approximate)
    acc_ref[...] += jnp.dot(h.astype(w2_ref.dtype), w2_ref[...],
                            preferred_element_type=jnp.float32)

    @pl.when(j == pl.num_programs(1) - 1)
    def _finalize():
        o_ref[...] = acc_ref[...].astype(o_ref.dtype)


def _chip_info():
    """(multi_tensorcore, vmem_capacity_bytes) -- perf heuristics only."""
    kind = ""
    devs = jax.devices()
    if devs:
        kind = devs[0].device_kind.lower()
    is_v7 = ("v7" in kind) or ("7x" in kind)
    multi_tc = is_v7 or ("v4" in kind) or ("v5p" in kind)
    vmem_cap = (64 if is_v7 else 128) * 2 ** 20
    return multi_tc, vmem_cap


def _supports_buffered():
    if not hasattr(pl, "Buffered"):
        return False
    try:
        pl.BlockSpec((8, 128), lambda i: (i, 0), pipeline_mode=pl.Buffered(1))
        return True
    except TypeError:
        return False


def _split_for_cores(block_b, tokens, pack, target_steps):
    """Shrink block_b until the token grid has >= target_steps blocks."""
    max_steps = _cdiv(_round_up(tokens, pack), pack)
    target = min(target_steps, max_steps)
    while block_b > pack and _cdiv(tokens, block_b) < target:
        block_b = max(pack, _round_down(block_b // 2, pack))
    return block_b


@functools.partial(jax.jit, static_argnames=("block_b_max", "approximate_gelu"))
def mlp(x, w1, w2, *, block_b_max=None, approximate_gelu=False):
    """Fused Mlp forward. x: (..., dim); w1: (dim, hidden); w2: (hidden, out)."""
    lead = x.shape[:-1]
    dim = x.shape[-1]
    hidden = w1.shape[1]
    out_features = w2.shape[1]
    assert w1.shape[0] == dim and w2.shape[0] == hidden

    x2 = x.reshape(-1, dim)
    tokens = x2.shape[0]
    itemsize = jnp.dtype(x2.dtype).itemsize
    # Sublane pack of the storage dtype: 8 rows f32, 16 bf16, 32 int8/fp8.
    pack = max(8, 32 // itemsize)

    multi_tc, vmem_cap = _chip_info()
    budget = (3 * vmem_cap) // 4           # 48 MiB on v7x, 96 MiB on v5e/v6e
    headroom = 2 * 2 ** 20                 # Mosaic internal scratch etc.
    block_b_hi = 1024 if block_b_max is None else block_b_max

    # Lane-dense padding of weight dims only (small, loaded once).  The
    # activation is streamed unpadded: its K block is the full `dim` extent.
    out_p = _round_up(out_features, 128)
    hid_p = _round_up(hidden, 128)

    w_bufs = 1 if _supports_buffered() else 2
    weight_bytes = (dim * hid_p + hid_p * out_p) * itemsize

    # Per-row VMEM of the resident-weights path: double-buffered x/out tiles,
    # the f32 fc1 activation + its recast, and the f32 output tile pre-cast.
    resident_row_bytes = (2 * dim * itemsize + 2 * out_p * itemsize
                          + hid_p * (4 + itemsize) + out_p * 4)
    resident_fits = (w_bufs * weight_bytes + headroom
                     + pack * resident_row_bytes) <= budget

    tokens_r = _round_up(tokens, pack)
    approx = bool(approximate_gelu)

    if resident_fits:
        block_b = min(block_b_hi,
                      _round_down((budget - headroom - w_bufs * weight_bytes)
                                  // resident_row_bytes, pack),
                      tokens_r)
        block_b = max(pack, _round_down(block_b, pack))
        if multi_tc:
            # Two TensorCores: >= 4 token blocks so each core still gets >= 2
            # pipelined steps.  Single-TC chips keep the largest block.
            block_b = _split_for_cores(block_b, tokens, pack, target_steps=4)

        w1p = w1 if hid_p == hidden else jnp.pad(
            w1, ((0, 0), (0, hid_p - hidden)))
        if hid_p == hidden and out_p == out_features:
            w2p = w2
        else:
            w2p = jnp.pad(w2, ((0, hid_p - hidden), (0, out_p - out_features)))

        def w_spec(shape):
            if w_bufs == 1:
                return pl.BlockSpec(shape, lambda i: (0, 0),
                                    pipeline_mode=pl.Buffered(1))
            return pl.BlockSpec(shape, lambda i: (0, 0))

        grid_spec = pltpu.PrefetchScalarGridSpec(
            num_scalar_prefetch=0,
            grid=(_cdiv(tokens, block_b),),
            in_specs=[
                # x tile: unpadded, full-extent K.  A partial last block has
                # row-local garbage in; its OOB output rows are masked.
                # (If profiling shows exposed x DMA, this spec can take
                #  pipeline_mode=pl.Buffered(3).)
                pl.BlockSpec((block_b, dim), lambda i: (i, 0)),
                w_spec((dim, hid_p)),        # W1, grid-invariant
                w_spec((hid_p, out_p)),      # W2, grid-invariant
            ],
            out_specs=pl.BlockSpec((block_b, out_p), lambda i: (i, 0)),
        )
        kernel = functools.partial(_mlp_kernel_resident, approximate=approx)
        vmem_need = w_bufs * weight_bytes + block_b * resident_row_bytes
        dim_sems = ("parallel",)
    else:
        # Hidden-dim tiling: W1+W2 exceed the VMEM budget (e.g. v7x, 64 MiB).
        # fc1's N axis / fc2's K axis is split into block_h columns; fc2
        # accumulates into an f32 VMEM scratch across the inner grid axis.
        target_b = max(pack, min(block_b_hi, 256, tokens_r))

        def tiled_need(bh, bb):
            return (2 * bh * (dim + out_p) * itemsize     # W1/W2 tiles (x2 buf)
                    + 2 * bb * dim * itemsize             # x tiles
                    + 2 * bb * out_p * itemsize           # out tiles
                    + bb * bh * (4 + itemsize)            # h f32 + bf16 recast
                    + bb * out_p * 4                      # f32 accumulator
                    + headroom)

        block_h = max(128, _round_down(min(hid_p, 2048), 128))
        while block_h > 128 and tiled_need(block_h, target_b) > budget:
            block_h -= 128

        tiled_fixed = 2 * block_h * (dim + out_p) * itemsize + headroom
        tiled_row_bytes = (2 * dim * itemsize + 2 * out_p * itemsize
                           + block_h * (4 + itemsize) + out_p * 4)
        block_b = max(pack, _round_down(
            min(block_b_hi,
                max(pack, (budget - tiled_fixed) // tiled_row_bytes),
                tokens_r),
            pack))
        if multi_tc:
            # Inner hidden axis already gives each core pipelined steps; just
            # make sure both cores get token work.
            block_b = _split_for_cores(block_b, tokens, pack, target_steps=2)

        # Pad hidden to a multiple of block_h so no partial hidden block can
        # mix undefined padding into valid rows (zero pad is exact:
        # GELU(0) == 0 and the matching W2 rows are zero).
        hid_pt = _round_up(hidden, block_h)
        w1p = jnp.pad(w1, ((0, 0), (0, hid_pt - hidden)))
        w2p = jnp.pad(w2, ((0, hid_pt - hidden), (0, out_p - out_features)))

        grid_spec = pltpu.PrefetchScalarGridSpec(
            num_scalar_prefetch=0,
            grid=(_cdiv(tokens, block_b), hid_pt // block_h),
            in_specs=[
                pl.BlockSpec((block_b, dim), lambda i, j: (i, 0)),
                pl.BlockSpec((dim, block_h), lambda i, j: (0, j)),
                pl.BlockSpec((block_h, out_p), lambda i, j: (j, 0)),
            ],
            out_specs=pl.BlockSpec((block_b, out_p), lambda i, j: (i, 0)),
            scratch_shapes=[pltpu.VMEM((block_b, out_p), jnp.float32)],
        )
        kernel = functools.partial(_mlp_kernel_hidden_tiled, approximate=approx)
        vmem_need = (tiled_fixed - headroom) + block_b * tiled_row_bytes
        dim_sems = ("parallel", "arbitrary")

    vmem_limit = int(min(budget, max(vmem_need + headroom, 32 * 2 ** 20)))

    out = pl.pallas_call(
        kernel,
        out_shape=jax.ShapeDtypeStruct((tokens, out_p), x.dtype),
        grid_spec=grid_spec,
        compiler_params=pltpu.CompilerParams(
            dimension_semantics=dim_sems,
            vmem_limit_bytes=vmem_limit),
    )(x2, w1p, w2p)

    if out_p != out_features:
        out = out[:, :out_features]
    return out.reshape(tuple(lead) + (out_features,))


def reference_mlp(x, w1, w2):
    """Pure-JAX reference mirroring the PyTorch forward (bias=False, drop=0)."""
    h = jnp.dot(x.reshape(-1, x.shape[-1]), w1,
                preferred_element_type=jnp.float32)
    h = jax.nn.gelu(h, approximate=False)          # exact erf GELU
    out = jnp.dot(h.astype(w2.dtype), w2, preferred_element_type=jnp.float32)
    return out.astype(x.dtype).reshape(x.shape[:-1] + (w2.shape[1],))


if __name__ == "__main__":
    # Small shapes consistent with Mlp(dim, mlp_ratio=4) applied to a
    # channels-last feature map: x is (B, H, W, dim).
    B, H, W, dim = 2, 8, 8, 32
    mlp_ratio = 4
    hidden = int(mlp_ratio * dim)        # 128
    out_features = dim                   # module default (out_features=None)

    key = jax.random.PRNGKey(0)
    kx, kw1, kw2 = jax.random.split(key, 3)

    # bf16 storage: native MXU dtype.
    x = jax.random.normal(kx, (B, H, W, dim),
                          dtype=jnp.float32).astype(jnp.bfloat16)
    w1 = (jax.random.normal(kw1, (dim, hidden), dtype=jnp.float32) * 0.05
          ).astype(jnp.bfloat16)
    w2 = (jax.random.normal(kw2, (hidden, out_features), dtype=jnp.float32) * 0.05
          ).astype(jnp.bfloat16)

    out = jax.block_until_ready(mlp(x, w1, w2))
    ref = reference_mlp(x, w1, w2)

    assert out.shape == (B, H, W, out_features)
    err = float(jnp.max(jnp.abs(out.astype(jnp.float32) - ref.astype(jnp.float32))))
    assert err < 2e-2, err

    print("KERNEL_OK")
</pallas_src>

<mosaic_0001>
module attributes {stable_mosaic.version = 11 : i64} {
  func.func @_mlp_kernel_resident(%arg0: i32, %arg1: memref<128x32xbf16, #tpu.memory_space<vmem>>, %arg2: memref<32x128xbf16, #tpu.memory_space<vmem>>, %arg3: memref<128x128xbf16, #tpu.memory_space<vmem>>, %arg4: memref<128x128xbf16, #tpu.memory_space<vmem>>) attributes {dimension_semantics = [#tpu.dimension_semantics<parallel>], iteration_bounds = array<i64: 1>, scalar_prefetch = 0 : i64, scratch_operands = 0 : i64, tpu.core_type = #tpu.core_type<tc>, window_params = [{transform_indices = @transform_0, window_bounds = array<i64: 128, 32>}, {pipeline_mode = #tpu.pipeline_mode<synchronous>, transform_indices = @transform_1, window_bounds = array<i64: 32, 128>}, {pipeline_mode = #tpu.pipeline_mode<synchronous>, transform_indices = @transform_2, window_bounds = array<i64: 128, 128>}, {transform_indices = @transform_3, window_bounds = array<i64: 128, 128>}]} {
    %c0 = arith.constant 0 : index
    %c0_0 = arith.constant 0 : index
    %0 = vector.load %arg1[%c0, %c0_0] : memref<128x32xbf16, #tpu.memory_space<vmem>>, vector<128x32xbf16>
    %c0_1 = arith.constant 0 : index
    %c0_2 = arith.constant 0 : index
    %1 = vector.load %arg2[%c0_1, %c0_2] : memref<32x128xbf16, #tpu.memory_space<vmem>>, vector<32x128xbf16>
    %cst = arith.constant dense<0.000000e+00> : vector<128x128xf32>
    %2 = tpu.matmul %0, %1, %cst {dimension_numbers = #tpu.dot_dimension_numbers<[1], [0], [0], [1], [0, 0, 1, 1], [], []>} : vector<128x32xbf16>, vector<32x128xbf16>, vector<128x128xf32> -> vector<128x128xf32>
    %cst_3 = arith.constant 0.707106769 : f32
    %3 = vector.broadcast %cst_3 : f32 to vector<128x128xf32>
    %4 = arith.mulf %2, %3 : vector<128x128xf32>
    %5 = math.erf %4 : vector<128x128xf32>
    %cst_4 = arith.constant 5.000000e-01 : f32
    %6 = vector.broadcast %cst_4 : f32 to vector<128x128xf32>
    %7 = arith.mulf %6, %5 : vector<128x128xf32>
    %cst_5 = arith.constant 5.000000e-01 : f32
    %8 = vector.broadcast %cst_5 : f32 to vector<128x128xf32>
    %9 = arith.addf %8, %7 : vector<128x128xf32>
    %10 = arith.mulf %2, %9 : vector<128x128xf32>
    %11 = arith.truncf %10 : vector<128x128xf32> to vector<128x128xbf16>
    %c0_6 = arith.constant 0 : index
    %c0_7 = arith.constant 0 : index
    %12 = vector.load %arg3[%c0_6, %c0_7] : memref<128x128xbf16, #tpu.memory_space<vmem>>, vector<128x128xbf16>
    %cst_8 = arith.constant dense<0.000000e+00> : vector<128x128xf32>
    %13 = tpu.matmul %11, %12, %cst_8 {dimension_numbers = #tpu.dot_dimension_numbers<[1], [0], [0], [1], [0, 0, 1, 1], [], []>} : vector<128x128xbf16>, vector<128x128xbf16>, vector<128x128xf32> -> vector<128x128xf32>
    %14 = arith.truncf %13 : vector<128x128xf32> to vector<128x128xbf16>
    %c0_9 = arith.constant 0 : index
    %c0_10 = arith.constant 0 : index
    %15 = vector.load %arg4[%c0_9, %c0_10] : memref<128x128xbf16, #tpu.memory_space<vmem>>, vector<128x128xbf16>
    tpu.vector_store %arg4[%c0_9, %c0_10], %14 {strides = array<i32>} : memref<128x128xbf16, #tpu.memory_space<vmem>>, vector<128x128xbf16>,
    return
  }
  func.func @transform_0(%arg0: i32) -> (i32, i32) {
    %c0_i32 = arith.constant 0 : i32
    %c0_i32_0 = arith.constant 0 : i32
    return %arg0, %c0_i32 : i32, i32
  }
  func.func @transform_1(%arg0: i32) -> (i32, i32) {
    %c0_i32 = arith.constant 0 : i32
    %c0_i32_0 = arith.constant 0 : i32
    %c0_i32_1 = arith.constant 0 : i32
    return %c0_i32, %c0_i32_0 : i32, i32
  }
  func.func @transform_2(%arg0: i32) -> (i32, i32) {
    %c0_i32 = arith.constant 0 : i32
    %c0_i32_0 = arith.constant 0 : i32
    %c0_i32_1 = arith.constant 0 : i32
    return %c0_i32, %c0_i32_0 : i32, i32
  }
  func.func @transform_3(%arg0: i32) -> (i32, i32) {
    %c0_i32 = arith.constant 0 : i32
    %c0_i32_0 = arith.constant 0 : i32
    return %arg0, %c0_i32 : i32, i32
  }
}

</mosaic_0001>

<bundles_post_ra>
// kernel: mlp.1
= control target key start
LH: loop header
LB: loop body
LE: loop exit
PB: predicated region body
PF: predicated region fallthrough
CT: control target
= control target key end

     0   :  { %vm88_vm0 = vcmask 261120   ;;  %s957_s0 = inlined_call_operand.vmem [shape: bf16[128,32], index: 0, kind: input, shape index: {}]   ;;  %s958_s1 = inlined_call_operand.vmem [shape: bf16[32,128], index: 1, kind: input, shape index: {}]   ;;  %s959_s2 = inlined_call_operand.vmem [shape: bf16[128,128], index: 2, kind: input, shape index: {}]   ;;  %s960_s3 = inlined_call_operand.hbm [shape: bf16[128,128], index: 3, kind: output, shape index: {}]  }
   0x1   :  { %v757_v0 = vld [vmem:[%s958_s1 + $0x8] sm:$0xff]   ;;  %v758_v1 = vld [vmem:[%s958_s1] sm:$0xff]   ;;  %v761_v4 = vld [vmem:[%s957_s0 + $0x10] sm:$0xff]  }
   0x2   :  { %686 = vmatprep.subr.bf16.mxu0 %v757_v0  ;;  %v759_v2 = vld [vmem:[%s957_s0] sm:$0xff]   ;;  %v760_v3 = vld [vmem:[%s957_s0 + $0x8] sm:$0xff]   ;;  %v762_v5 = vld [vmem:[%s957_s0 + $0x18] sm:$0xff]  }
   0x3   :  { %687 = vmatpush3.bf16.msra.mxu0 %v757_v0  ;;  %690 = vmatprep.mubr.msk.bf16.mxu0 %vm88_vm0, %v759_v2  ;;  %v763_v6 = vld [vmem:[%s957_s0 + $0x20] sm:$0xff]  }
   0x4   :  { %688 = vmatprep.subr.bf16.mxu0 %v758_v1 }
   0x7   :  { %689 = vmatpush3.bf16.msra.mxu0 %v758_v1 }
   0xa   :  { %691 = vmatmul.mubr.msk.bf16.vlgmr.msra.gmra.mxu0 %vm88_vm0, %v760_v3 }
   0xb   :  { %694 = vmatprep.mubr.msk.bf16.mxu0 %vm88_vm0, %v761_v4 }
   0xc   :  { %8 = vsyncpa [#allocation3], 0  ;;  %v764_v7 = vld [vmem:[%s957_s0 + $0x28] sm:$0xff]   ;;  %v765_v8 = vld [vmem:[%s957_s0 + $0x30] sm:$0xff]  }
   0xd   :  { %v766_v9 = vld [vmem:[%s957_s0 + $0x38] sm:$0xff]   ;;  %v768_v11 = vld [vmem:[%s959_s2 + $0x30] sm:$0xff]   ;;  %v769_v12 = vld [vmem:[%s959_s2 + $0x28] sm:$0xff]  }
   0xe   :  { %v767_v10 = vld [vmem:[%s959_s2 + $0x38] sm:$0xff]   ;;  %v770_v13 = vld [vmem:[%s959_s2 + $0x20] sm:$0xff]   ;;  %v772_v15 = vld [vmem:[%s959_s2 + $0x10] sm:$0xff]  }
   0xf   :  { %706 = vmatprep.subr.bf16.mxu0 %v767_v10  ;;  %738 = vmatprep.subr.bf16.mxu1 %v767_v10  ;;  %v771_v14 = vld [vmem:[%s959_s2 + $0x18] sm:$0xff]   ;;  %v773_v16 = vld [vmem:[%s959_s2 + $0x8] sm:$0xff]   ;;  %v774_v17 = vld [vmem:[%s959_s2] sm:$0xff]   ;;  %s829_s2 = smov [#allocation2]  }
  0x10   :  { %707 = vmatpush3.bf16.msra.mxu0 %v767_v10  ;;  %746 = vmatpush3.bf16.msra.mxu1 %v767_v10  ;;  %s544_s19 = sshll.u32 %s829_s2, 4  ;;  %s545_s19 = int_to_ptr.vmem [resolvable:$true] %s544_s19 }
  0x11   :  { %708 = vmatprep.subr.bf16.mxu0 %v768_v11  ;;  %739 = vmatprep.subr.bf16.mxu1 %v768_v11  ;;  %s807_s20 = scalar_lea.vmem %s545_s19, 1024  ;;  %p812_p1 = scmp.lt.s32.totalorder %s545_s19, %s545_s19 }
  0x12   :  { %695 = vmatmul.mubr.msk.bf16.gmra.mxu0 %vm88_vm0, %v762_v5  ;;  %p808_p0 = scmp.ne.s32.totalorder %s545_s19, %s807_s20  ;;  %p813_p2 = scmp.lt.s32.totalorder %s807_s20, %s807_s20 }
  0x13   :  { %698 = vmatprep.mubr.msk.bf16.mxu0 %vm88_vm0, %v763_v6 }
  0x14   :  { %709 = vmatpush3.bf16.msra.mxu0 %v768_v11  ;;  %747 = vmatpush3.bf16.msra.mxu1 %v768_v11  ;;  %p814_p3 = por %p813_p2, %p812_p1 }
  0x15   :  { %710 = vmatprep.subr.bf16.mxu0 %v769_v12  ;;  %740 = vmatprep.subr.bf16.mxu1 %v769_v12 }
  0x16   :  { %p815_p4 = pnand %p814_p3, %p808_p0 }
  0x18   :  { %711 = vmatpush3.bf16.msra.mxu0 %v769_v12  ;;  %748 = vmatpush3.bf16.msra.mxu1 %v769_v12 }
  0x19   :  { %712 = vmatprep.subr.bf16.mxu0 %v770_v13  ;;  %741 = vmatprep.subr.bf16.mxu1 %v770_v13 }
  0x1a   :  { %699 = vmatmul.mubr.msk.bf16.gmra.mxu0 %vm88_vm0, %v764_v7 }
  0x1b   :  { %702 = vmatprep.mubr.msk.bf16.mxu0 %vm88_vm0, %v765_v8 }
  0x1c   :  { %713 = vmatpush3.bf16.msra.mxu0 %v770_v13  ;;  %749 = vmatpush3.bf16.msra.mxu1 %v770_v13 }
  0x1d   :  { %714 = vmatprep.subr.bf16.mxu0 %v771_v14  ;;  %742 = vmatprep.subr.bf16.mxu1 %v771_v14 }
  0x20   :  { %715 = vmatpush3.bf16.msra.mxu0 %v771_v14  ;;  %750 = vmatpush3.bf16.msra.mxu1 %v771_v14 }
  0x21   :  { %716 = vmatprep.subr.bf16.mxu0 %v772_v15  ;;  %743 = vmatprep.subr.bf16.mxu1 %v772_v15 }
  0x22   :  { %703 = vmatmul.mubr.msk.bf16.gmra.mxu0 %vm88_vm0, %v766_v9 }
  0x24   :  { %717 = vmatpush3.bf16.msra.mxu0 %v772_v15  ;;  %751 = vmatpush3.bf16.msra.mxu1 %v772_v15 }
  0x25   :  { %718 = vmatprep.subr.bf16.mxu0 %v773_v16  ;;  %744 = vmatprep.subr.bf16.mxu1 %v773_v16 }
  0x28   :  { %719 = vmatpush3.bf16.msra.mxu0 %v773_v16  ;;  %752 = vmatpush3.bf16.msra.mxu1 %v773_v16 }
  0x29   :  { %720 = vmatprep.subr.bf16.mxu0 %v774_v17  ;;  %745 = vmatprep.subr.bf16.mxu1 %v774_v17 }
  0x2c   :  { %721 = vmatpush3.bf16.msra.mxu0 %v774_v17  ;;  %753 = vmatpush3.bf16.msra.mxu1 %v774_v17 }
  0xca   :  { %v692_v18 = vpop.f32.mrf.mxu0 }
  0xcb   :  { %v212_v19 = vmul.f32 0.70710677, %v692_v18 }
  0xcc   :  { %v147_v20 = vpop.f32.mrf.mxu0 }
  0xcd   :  { %v210_v21 = vmul.f32 0.70710677, %v147_v20  ;;  %775 = verf.f32 %v212_v19 }
  0xce   :  { %v693_v22 = vpop.f32.mrf.mxu0 }
  0xcf   :  { %777 = verf.f32 %v210_v21  ;;  %v213_v23 = vmul.f32 0.70710677, %v693_v22 }
  0xd0   :  { %v150_v24 = vpop.f32.mrf.mxu0 }
  0xd1   :  { %779 = verf.f32 %v213_v23  ;;  %v211_v25 = vmul.f32 0.70710677, %v150_v24 }
  0xd2   :  { %v914_v26 = vpop.f32.mrf.mxu0 }
  0xd3   :  { %781 = verf.f32 %v211_v25  ;;  %v216_v27 = vmul.f32 0.70710677, %v914_v26 }
  0xd4   :  { %v917_v28 = vpop.f32.mrf.mxu0 }
  0xd5   :  { %v214_v29 = vmul.f32 0.70710677, %v917_v28  ;;  %783 = verf.f32 %v216_v27 }
  0xd6   :  { %v920_v30 = vpop.f32.mrf.mxu0 }
  0xd7   :  { %785 = verf.f32 %v214_v29  ;;  %v217_v31 = vmul.f32 0.70710677, %v920_v30 }
  0xd8   :  { %v923_v32 = vpop.f32.mrf.mxu0 }
  0xd9   :  { %787 = verf.f32 %v217_v31  ;;  %v215_v33 = vmul.f32 0.70710677, %v923_v32 }
  0xda   :  { %v926_v34 = vpop.f32.mrf.mxu0  ;;  %v776_v35 = vpop.eup %775 }
  0xdb   :  { %789 = verf.f32 %v215_v33  ;;  %v220_v36 = vmul.f32 0.70710677, %v926_v34  ;;  %v244_v42 = vmul.f32 0.5, %v776_v35 }
  0xdc   :  { %v778_v37 = vpop.eup %777  ;;  %v929_v38 = vpop.f32.mrf.mxu0 }
  0xdd   :  { %v242_v39 = vmul.f32 0.5, %v778_v37  ;;  %v218_v40 = vmul.f32 0.70710677, %v929_v38  ;;  %791 = verf.f32 %v220_v36  ;;  %v260_v52 = vadd.f32 0.5, %v244_v42 }
  0xde   :  { %v780_v41 = vpop.eup %779  ;;  %v932_v43 = vpop.f32.mrf.mxu0 }
  0xdf   :  { %v245_v44 = vmul.f32 0.5, %v780_v41  ;;  %793 = verf.f32 %v218_v40  ;;  %v221_v46 = vmul.f32 0.70710677, %v932_v43  ;;  %v258_v48 = vadd.f32 0.5, %v242_v39 }
  0xe0   :  { %v782_v45 = vpop.eup %781  ;;  %v935_v47 = vpop.f32.mrf.mxu0  ;;  %v276_v0 = vmul.f32 %v692_v18, %v260_v52 }
  0xe1   :  { %v261_v49 = vadd.f32 0.5, %v245_v44  ;;  %v243_v50 = vmul.f32 0.5, %v782_v45  ;;  %v219_v51 = vmul.f32 0.70710677, %v935_v47  ;;  %795 = verf.f32 %v221_v46 }
  0xe2   :  { %v938_v53 = vpop.f32.mrf.mxu0  ;;  %v784_v54 = vpop.eup %783  ;;  %v274_v60 = vmul.f32 %v258_v48, %v147_v20 }
  0xe3   :  { %v259_v55 = vadd.f32 0.5, %v243_v50  ;;  %797 = verf.f32 %v219_v51  ;;  %v277_v57 = vmul.f32 %v693_v22, %v261_v49  ;;  %v224_v58 = vmul.f32 0.70710677, %v938_v53 }
  0xe4   :  { %v786_v56 = vpop.eup %785  ;;  %v941_v59 = vpop.f32.mrf.mxu0  ;;  %v248_v1 = vmul.f32 0.5, %v784_v54 }
  0xe5   :  { %v275_v61 = vmul.f32 %v259_v55, %v150_v24  ;;  %v246_v62 = vmul.f32 0.5, %v786_v56  ;;  %799 = verf.f32 %v224_v58  ;;  %v222_v2 = vmul.f32 0.70710677, %v941_v59 }
  0xe6   :  { %v788_v63 = vpop.eup %787  ;;  %v705_v3 = vpop.f32.mrf.mxu0  ;;  %v291_v7 = vpack.c.bf16 %v277_v57, %v276_v0  ;;  %v264_v14 = vadd.f32 0.5, %v248_v1 }
  0xe7   :  { %v290_v4 = vpack.c.bf16 %v275_v61, %v274_v60  ;;  %v249_v5 = vmul.f32 0.5, %v788_v63  ;;  %801 = verf.f32 %v222_v2  ;;  %v225_v8 = vmul.f32 0.70710677, %v705_v3 }
  0xe8   :  { %v790_v6 = vpop.eup %789  ;;  %v198_v9 = vpop.f32.mrf.mxu0  ;;  %v262_v10 = vadd.f32 0.5, %v246_v62  ;;  %v280_v22 = vmul.f32 %v914_v26, %v264_v14 }
  0xe9   :  { %v265_v11 = vadd.f32 0.5, %v249_v5  ;;  %v247_v12 = vmul.f32 0.5, %v790_v6  ;;  %v223_v13 = vmul.f32 0.70710677, %v198_v9  ;;  %722 = vmatprep.mubr.bf16.mxu0 %v290_v4  ;;  %803 = verf.f32 %v225_v8 }
  0xea   :  { %723 = vmatmul.mubr.bf16.vlgmr.msra.gmra.mxu0 %v291_v7  ;;  %v792_v15 = vpop.eup %791  ;;  %v278_v19 = vmul.f32 %v262_v10, %v917_v28 }
  0xeb   :  { %v263_v16 = vadd.f32 0.5, %v247_v12  ;;  %805 = verf.f32 %v223_v13  ;;  %v281_v18 = vmul.f32 %v920_v30, %v265_v11  ;;  %v252_v23 = vmul.f32 0.5, %v792_v15 }
  0xec   :  { %v794_v17 = vpop.eup %793 }
  0xed   :  { %v279_v20 = vmul.f32 %v263_v16, %v923_v32  ;;  %v250_v21 = vmul.f32 0.5, %v794_v17  ;;  %v293_v29 = vpack.c.bf16 %v281_v18, %v280_v22  ;;  %v268_v36 = vadd.f32 0.5, %v252_v23 }
  0xee   :  { %v796_v24 = vpop.eup %795 }
  0xef   :  { %v292_v25 = vpack.c.bf16 %v279_v20, %v278_v19  ;;  %v253_v31 = vmul.f32 0.5, %v796_v24  ;;  %v266_v33 = vadd.f32 0.5, %v250_v21  ;;  %v284_v41 = vmul.f32 %v926_v34, %v268_v36 }
  0xf0   :  { %v798_v27 = vpop.eup %797 }
  0xf1   :  { %v251_v35 = vmul.f32 0.5, %v798_v27  ;;  %726 = vmatprep.mubr.bf16.mxu1 %v292_v25  ;;  %v269_v37 = vadd.f32 0.5, %v253_v31  ;;  %v282_v40 = vmul.f32 %v266_v33, %v929_v38 }
  0xf2   :  { %727 = vmatmul.mubr.bf16.vlgmr.msra.gmra.mxu1 %v293_v29  ;;  %v800_v30 = vpop.eup %799 }
  0xf3   :  { %v267_v39 = vadd.f32 0.5, %v251_v35  ;;  %v285_v28 = vmul.f32 %v932_v43, %v269_v37  ;;  %v256_v42 = vmul.f32 0.5, %v800_v30 }
  0xf4   :  { %v802_v32 = vpop.eup %801 }
  0xf5   :  { %v283_v26 = vmul.f32 %v267_v39, %v935_v47  ;;  %v254_v44 = vmul.f32 0.5, %v802_v32  ;;  %v295_v49 = vpack.c.bf16 %v285_v28, %v284_v41  ;;  %v272_v54 = vadd.f32 0.5, %v256_v42 }
  0xf6   :  { %v804_v45 = vpop.eup %803 }
  0xf7   :  { %v294_v46 = vpack.c.bf16 %v283_v26, %v282_v40  ;;  %v257_v50 = vmul.f32 0.5, %v804_v45  ;;  %v270_v51 = vadd.f32 0.5, %v254_v44  ;;  %v288_v34 = vmul.f32 %v938_v53, %v272_v54 }
  0xf8   :  { %v806_v48 = vpop.eup %805 }
  0xf9   :  { %v255_v52 = vmul.f32 0.5, %v806_v48  ;;  %730 = vmatprep.mubr.bf16.mxu1 %v294_v46  ;;  %v273_v55 = vadd.f32 0.5, %v257_v50  ;;  %v286_v38 = vmul.f32 %v270_v51, %v941_v59 }
  0xfa   :  { %731 = vmatmul.mubr.bf16.gmra.mxu1 %v295_v49 }
  0xfb   :  { %v271_v43 = vadd.f32 0.5, %v255_v52  ;;  %v289_v56 = vmul.f32 %v705_v3, %v273_v55 }
  0xfd   :  { %v287_v47 = vmul.f32 %v271_v43, %v198_v9  ;;  %v297_v58 = vpack.c.bf16 %v289_v56, %v288_v34 }
  0xff   :  { %v296_v57 = vpack.c.bf16 %v287_v47, %v286_v38 }
 0x101   :  { %734 = vmatprep.mubr.bf16.mxu1 %v296_v57 }
 0x102   :  { %735 = vmatmul.mubr.bf16.gmra.mxu1 %v297_v58 }
 0x1aa   :  { %v724_v60 = vpop.f32.mrf.mxu0 }
 0x1ac   :  { %v396_v61 = vpop.f32.mrf.mxu0 }
 0x1ae   :  { %v725_v62 = vpop.f32.mrf.mxu0 }
 0x1af   :  { %v621_v63 = vpack.c.bf16 %v725_v62, %v724_v60 }
 0x1b0   :  { %v399_v0 = vpop.f32.mrf.mxu0 }
 0x1b1   :  { %653 = vst [vmem:[#allocation2 + $0x8] sm:$0xff] %v621_v63   ;;  %v616_v1 = vpack.c.bf16 %v399_v0, %v396_v61 }
 0x1b2   :  { %v728_v2 = vpop.f32.mrf.mxu1 }
 0x1b3   :  { %617 = vst [vmem:[#allocation2] sm:$0xff] %v616_v1  }
 0x1b4   :  { %v412_v4 = vpop.f32.mrf.mxu1 }
 0x1b6   :  { %v729_v3 = vpop.f32.mrf.mxu1 }
 0x1b7   :  { %v631_v5 = vpack.c.bf16 %v729_v3, %v728_v2 }
 0x1b8   :  { %v415_v59 = vpop.f32.mrf.mxu1 }
 0x1b9   :  { %655 = vst [vmem:[#allocation2 + $0x18] sm:$0xff] %v631_v5   ;;  %v626_v6 = vpack.c.bf16 %v415_v59, %v412_v4 }
 0x1ba   :  { %v732_v53 = vpop.f32.mrf.mxu1 }
 0x1bb   :  { %654 = vst [vmem:[#allocation2 + $0x10] sm:$0xff] %v626_v6  }
 0x1bc   :  { %v428_v7 = vpop.f32.mrf.mxu1 }
 0x1be   :  { %v733_v8 = vpop.f32.mrf.mxu1 }
 0x1bf   :  { %v641_v9 = vpack.c.bf16 %v733_v8, %v732_v53 }
 0x1c0   :  { %v431_v10 = vpop.f32.mrf.mxu1 }
 0x1c1   :  { %657 = vst [vmem:[#allocation2 + $0x28] sm:$0xff] %v641_v9   ;;  %v636_v11 = vpack.c.bf16 %v431_v10, %v428_v7 }
 0x1c2   :  { %v736_v12 = vpop.f32.mrf.mxu1 }
 0x1c3   :  { %656 = vst [vmem:[#allocation2 + $0x20] sm:$0xff] %v636_v11  }
 0x1c4   :  { %v444_v13 = vpop.f32.mrf.mxu1 }
 0x1c6   :  { %v737_v14 = vpop.f32.mrf.mxu1 }
 0x1c7   :  { %v651_v15 = vpack.c.bf16 %v737_v14, %v736_v12 }
 0x1c8   :  { %v447_v16 = vpop.f32.mrf.mxu1 }
 0x1c9   :  { %659 = vst [vmem:[#allocation2 + $0x38] sm:$0xff] %v651_v15   ;;  %v646_v17 = vpack.c.bf16 %v447_v16, %v444_v13 }
 0x1cb   :  { %658 = vst [vmem:[#allocation2 + $0x30] sm:$0xff] %v646_v17  }
 0x1cc   :  { %818 = shalt.err (!%p815_p4)
}
 0x1cd   :  { %s830_s21 = smov 64   ;;  %s831_s1 = smov 4  }
 0x1ce   :  { %550 = dma.vmem_to_hbm [thread:$0]  %s545_s19, 1024, %s960_s3, [#allocation3], %s830_s21, %s830_s21, %s831_s1  }
 0x1cf   :  { %827 = dma.done.wait [#allocation3], 1024  }
 0x1d0   :  { %828 = vsyncadd [#allocation3], 4294966272 }
 0x1d1   :  { %554 = vsyncpa [#allocation3], 1 }

</bundles_post_ra>
